<compile_context>
chip_gen: v6e
topology: v6e:2x2x1
jax: 0.10.0
libtpu: 0.0.40
codegen_flags: <defaults>
</compile_context>

<pallas_src>
import jax
import jax.numpy as jnp
from jax.experimental import pallas as pl
from jax.experimental.pallas import tpu as pltpu

LANE = 128    # TPU lane width (last-dim vreg extent)
SUBLANE = 8   # TPU sublane width (second-to-last-dim vreg extent, f32)


def _round_up(n, m):
    return ((n + m - 1) // m) * m


def mlp_kernel(x_ref, w1_ref, b1_ref, w2_ref, b2_ref, o_ref):
    # layer1: Linear(input_size, h1_pad) + ReLU   (intermediate stays in vregs/VMEM)
    h = jnp.dot(x_ref[...], w1_ref[...], preferred_element_type=jnp.float32)
    h = jnp.maximum(h + b1_ref[...], 0.0)          # b1 is (1, h1_pad) -> broadcasts over batch
    # layer2: Linear(h1_pad, h2_pad) + ReLU
    y = jnp.dot(h, w2_ref[...], preferred_element_type=jnp.float32)
    y = jnp.maximum(y + b2_ref[...], 0.0)
    o_ref[...] = y.astype(o_ref.dtype)             # lane-dense store (last dim = 128-padded)


def prepare_params(w1, b1, w2, b2):
    """One-time weight prep (hoisted out of the per-call hot path).

    w1: (h1, in) PyTorch Linear layout; b1: (h1,); w2: (h2, h1); b2: (h2,).
    Returns (in, out)-layout weights with BOTH output feature dims zero-padded to a
    multiple of 128 lanes, plus the true h2 for un-padding the result.
    """
    h1, in_size = w1.shape
    h2 = w2.shape[0]
    h1_pad = _round_up(h1, LANE)
    h2_pad = _round_up(h2, LANE)

    # layer1: (in_size, h1_pad), zero-padded columns
    w1_t = jnp.zeros((in_size, h1_pad), jnp.float32).at[:, :h1].set(
        jnp.asarray(w1, jnp.float32).T)
    b1_2d = jnp.zeros((1, h1_pad), jnp.float32).at[:, :h1].set(
        jnp.asarray(b1, jnp.float32))
    # layer2: (h1_pad, h2_pad); padded h1 rows are zero so padded (zero) activations
    # contribute nothing; padded h2 columns produce garbage-free zeros + relu(0+0)=0.
    w2_t = jnp.zeros((h1_pad, h2_pad), jnp.float32).at[:h1, :h2].set(
        jnp.asarray(w2, jnp.float32).T)
    b2_2d = jnp.zeros((1, h2_pad), jnp.float32).at[:, :h2].set(
        jnp.asarray(b2, jnp.float32))
    return (w1_t, b1_2d, w2_t, b2_2d, h2)


def torch_model_forward(x, params, *, tile_b=256):
    """Inference forward (y is None branch). x: (B, input_size); params from prepare_params."""
    w1_t, b1_2d, w2_t, b2_2d, h2 = params
    B, in_size = x.shape
    assert w1_t.shape[0] == in_size, (w1_t.shape, in_size)
    h1_pad = w1_t.shape[1]
    h2_pad = w2_t.shape[1]

    # Batch tiling: sublane-align the tile, clamp to the padded batch, pad batch to a
    # tile multiple so every grid step sees a full block.
    tile_b = _round_up(max(int(tile_b), SUBLANE), SUBLANE)
    tile_b = int(min(tile_b, _round_up(B, SUBLANE)))
    B_pad = _round_up(B, tile_b)
    if B_pad != B:
        x = jnp.pad(x, ((0, B_pad - B), (0, 0)))

    grid = (B_pad // tile_b,)

    out = pl.pallas_call(
        mlp_kernel,
        out_shape=jax.ShapeDtypeStruct((B_pad, h2_pad), jnp.float32),
        grid=grid,
        in_specs=[
            pl.BlockSpec((tile_b, in_size), lambda i: (i, 0)),   # x: marches over batch
            pl.BlockSpec((in_size, h1_pad), lambda i: (0, 0)),   # w1: VMEM-resident
            pl.BlockSpec((1, h1_pad), lambda i: (0, 0)),         # b1: VMEM-resident
            pl.BlockSpec((h1_pad, h2_pad), lambda i: (0, 0)),    # w2: VMEM-resident
            pl.BlockSpec((1, h2_pad), lambda i: (0, 0)),         # b2: VMEM-resident
        ],
        out_specs=pl.BlockSpec((tile_b, h2_pad), lambda i: (i, 0)),
        compiler_params=pltpu.CompilerParams(
            dimension_semantics=("parallel",),   # batch steps are independent
        ),
    )(x, w1_t, b1_2d, w2_t, b2_2d)

    # Strip batch padding and the lane-padding of the output feature dim.
    return out[:B, :h2]

# TODO(synk): the CrossEntropyLoss training branch (y is not None) is not part of the
# inference hot path and is left to plain JAX if ever needed.
# TODO(synk): for large hidden sizes on v6e/v7x, cast matmul operands to bf16 (keep f32
# accumulation + f32 bias/ReLU); neutral at these toy shapes so f32 is kept for exactness.


if __name__ == "__main__":
    # Small shapes consistent with the module's forward.
    batch = 20                 # deliberately not a tile multiple -> exercises padding
    input_size = 32
    hidden_size1 = 64
    hidden_size2 = 16

    key = jax.random.PRNGKey(0)
    kx, kw1, kb1, kw2, kb2 = jax.random.split(key, 5)

    x = jax.random.normal(kx, (batch, input_size), dtype=jnp.float32)
    # PyTorch Linear stores weight as (out, in).
    w1 = jax.random.normal(kw1, (hidden_size1, input_size), dtype=jnp.float32) * 0.1
    b1 = jax.random.normal(kb1, (hidden_size1,), dtype=jnp.float32) * 0.1
    w2 = jax.random.normal(kw2, (hidden_size2, hidden_size1), dtype=jnp.float32) * 0.1
    b2 = jax.random.normal(kb2, (hidden_size2,), dtype=jnp.float32) * 0.1

    # One-time param prep (transpose + lane padding), hoisted out of the call path.
    params = prepare_params(w1, b1, w2, b2)

    # Small tile here so multiple grid steps (pipelining + parallel axis) are exercised.
    y_pred = torch_model_forward(x, params, tile_b=8)
    jax.block_until_ready(y_pred)

    # Reference check in plain JAX (same math as the PyTorch forward with y=None).
    ref = jnp.maximum(jnp.maximum(x @ w1.T + b1, 0.0) @ w2.T + b2, 0.0)
    assert y_pred.shape == (batch, hidden_size2), y_pred.shape
    assert jnp.allclose(y_pred, ref, atol=1e-5, rtol=1e-5)

    print("KERNEL_OK")
</pallas_src>

<mosaic_0001>
module attributes {stable_mosaic.version = 11 : i64} {
  func.func @mlp_kernel(%arg0: i32, %arg1: memref<8x32xf32, #tpu.memory_space<vmem>>, %arg2: memref<32x128xf32, #tpu.memory_space<vmem>>, %arg3: memref<1x128xf32, #tpu.memory_space<vmem>>, %arg4: memref<128x128xf32, #tpu.memory_space<vmem>>, %arg5: memref<1x128xf32, #tpu.memory_space<vmem>>, %arg6: memref<8x128xf32, #tpu.memory_space<vmem>>) attributes {dimension_semantics = [#tpu.dimension_semantics<parallel>], iteration_bounds = array<i64: 3>, scalar_prefetch = 0 : i64, scratch_operands = 0 : i64, tpu.core_type = #tpu.core_type<tc>, window_params = [{transform_indices = @transform_0, window_bounds = array<i64: 8, 32>}, {pipeline_mode = #tpu.pipeline_mode<synchronous>, transform_indices = @transform_1, window_bounds = array<i64: 32, 128>}, {pipeline_mode = #tpu.pipeline_mode<synchronous>, transform_indices = @transform_2, window_bounds = array<i64: 1, 128>}, {pipeline_mode = #tpu.pipeline_mode<synchronous>, transform_indices = @transform_3, window_bounds = array<i64: 128, 128>}, {pipeline_mode = #tpu.pipeline_mode<synchronous>, transform_indices = @transform_4, window_bounds = array<i64: 1, 128>}, {transform_indices = @transform_5, window_bounds = array<i64: 8, 128>}]} {
    %c0 = arith.constant 0 : index
    %c0_0 = arith.constant 0 : index
    %0 = vector.load %arg1[%c0, %c0_0] : memref<8x32xf32, #tpu.memory_space<vmem>>, vector<8x32xf32>
    %c0_1 = arith.constant 0 : index
    %c0_2 = arith.constant 0 : index
    %1 = vector.load %arg2[%c0_1, %c0_2] : memref<32x128xf32, #tpu.memory_space<vmem>>, vector<32x128xf32>
    %cst = arith.constant dense<0.000000e+00> : vector<8x128xf32>
    %2 = tpu.matmul %0, %1, %cst {dimension_numbers = #tpu.dot_dimension_numbers<[1], [0], [0], [1], [0, 0, 1, 1], [], []>} : vector<8x32xf32>, vector<32x128xf32>, vector<8x128xf32> -> vector<8x128xf32>
    %c0_3 = arith.constant 0 : index
    %c0_4 = arith.constant 0 : index
    %3 = vector.load %arg3[%c0_3, %c0_4] : memref<1x128xf32, #tpu.memory_space<vmem>>, vector<1x128xf32>
    %4 = vector.broadcast %3 : vector<1x128xf32> to vector<8x128xf32>
    %5 = arith.addf %2, %4 : vector<8x128xf32>
    %cst_5 = arith.constant 0.000000e+00 : f32
    %6 = vector.broadcast %cst_5 : f32 to vector<8x128xf32>
    %7 = arith.maximumf %5, %6 : vector<8x128xf32>
    %c0_6 = arith.constant 0 : index
    %c0_7 = arith.constant 0 : index
    %8 = vector.load %arg4[%c0_6, %c0_7] : memref<128x128xf32, #tpu.memory_space<vmem>>, vector<128x128xf32>
    %cst_8 = arith.constant dense<0.000000e+00> : vector<8x128xf32>
    %9 = tpu.matmul %7, %8, %cst_8 {dimension_numbers = #tpu.dot_dimension_numbers<[1], [0], [0], [1], [0, 0, 1, 1], [], []>} : vector<8x128xf32>, vector<128x128xf32>, vector<8x128xf32> -> vector<8x128xf32>
    %c0_9 = arith.constant 0 : index
    %c0_10 = arith.constant 0 : index
    %10 = vector.load %arg5[%c0_9, %c0_10] : memref<1x128xf32, #tpu.memory_space<vmem>>, vector<1x128xf32>
    %11 = vector.broadcast %10 : vector<1x128xf32> to vector<8x128xf32>
    %12 = arith.addf %9, %11 : vector<8x128xf32>
    %cst_11 = arith.constant 0.000000e+00 : f32
    %13 = vector.broadcast %cst_11 : f32 to vector<8x128xf32>
    %14 = arith.maximumf %12, %13 : vector<8x128xf32>
    %c0_12 = arith.constant 0 : index
    %c0_13 = arith.constant 0 : index
    %15 = vector.load %arg6[%c0_12, %c0_13] : memref<8x128xf32, #tpu.memory_space<vmem>>, vector<8x128xf32>
    tpu.vector_store %arg6[%c0_12, %c0_13], %14 {strides = array<i32>} : memref<8x128xf32, #tpu.memory_space<vmem>>, vector<8x128xf32>,
    return
  }
  func.func @transform_0(%arg0: i32) -> (i32, i32) {
    %c0_i32 = arith.constant 0 : i32
    %c0_i32_0 = arith.constant 0 : i32
    return %arg0, %c0_i32 : i32, i32
  }
  func.func @transform_1(%arg0: i32) -> (i32, i32) {
    %c0_i32 = arith.constant 0 : i32
    %c0_i32_0 = arith.constant 0 : i32
    %c0_i32_1 = arith.constant 0 : i32
    return %c0_i32, %c0_i32_0 : i32, i32
  }
  func.func @transform_2(%arg0: i32) -> (i32, i32) {
    %c0_i32 = arith.constant 0 : i32
    %c0_i32_0 = arith.constant 0 : i32
    %c0_i32_1 = arith.constant 0 : i32
    return %c0_i32, %c0_i32_0 : i32, i32
  }
  func.func @transform_3(%arg0: i32) -> (i32, i32) {
    %c0_i32 = arith.constant 0 : i32
    %c0_i32_0 = arith.constant 0 : i32
    %c0_i32_1 = arith.constant 0 : i32
    return %c0_i32, %c0_i32_0 : i32, i32
  }
  func.func @transform_4(%arg0: i32) -> (i32, i32) {
    %c0_i32 = arith.constant 0 : i32
    %c0_i32_0 = arith.constant 0 : i32
    %c0_i32_1 = arith.constant 0 : i32
    return %c0_i32, %c0_i32_0 : i32, i32
  }
  func.func @transform_5(%arg0: i32) -> (i32, i32) {
    %c0_i32 = arith.constant 0 : i32
    %c0_i32_0 = arith.constant 0 : i32
    return %arg0, %c0_i32 : i32, i32
  }
}

</mosaic_0001>

<bundles_post_ra>
// kernel: tpu_custom_call.1
= control target key start
LH: loop header
LB: loop body
LE: loop exit
PB: predicated region body
PF: predicated region fallthrough
CT: control target
= control target key end

     0   :  { %10 = vsyncpa [#allocation3], 0  ;;  %s1095_s0 = inlined_call_operand.hbm [shape: f32[24,32], index: 0, kind: input, shape index: {}]   ;;  %s1096_s1 = inlined_call_operand.hbm [shape: f32[32,128], index: 1, kind: input, shape index: {}]   ;;  %s1097_s2 = inlined_call_operand.vmem [shape: f32[1,128], index: 2, kind: input, shape index: {}]   ;;  %s1098_s3 = inlined_call_operand.hbm [shape: f32[128,128], index: 3, kind: input, shape index: {}]   ;;  %s1099_s4 = inlined_call_operand.vmem [shape: f32[1,128], index: 4, kind: input, shape index: {}]   ;;  %s1100_s5 = inlined_call_operand.hbm [shape: f32[24,128], index: 5, kind: output, shape index: {}]  }
   0x1   :  { %12 = vsyncpa [#allocation3 + $0x1], 0 }
   0x2   :  { %13 = vsyncpa [#allocation6], 0 }
   0x3   :  { %14 = vsyncpa [#allocation4], 0 }
   0x4   :  { %16 = vsyncpa [#allocation4 + $0x1], 0  ;;  %s900_s18 = smov 0   ;;  %s902_s19 = smov 0  }
   0x5   :  { %s904_s20 = smov 0   ;;  %s906_s21 = smov 0  }
   0x6 LB: > { %s921_s22 = sadd.s32 4294967295, %s860_s21   ;;  %s554_s23 = sadd.s32 4294967294, %s860_s21   ;;  %s860_s21 = sphi %s906_s21, %s1121_s21   ;;  %s856_s20 = sphi %s904_s20, %s1120_s20   ;;  %s852_s19 = sphi %s902_s19, %s1119_s19   ;;  %s848_s18 = sphi %s900_s18, %s1118_s18  }
   0x7   : > { %p42_p0 = scmp.ne.s32.totalorder %s852_s19, %s848_s18  ;;  %p1101_p1 = scmp.eq.s32.totalorder %s921_s22, 0 }
   0x8   : > { %p156_p3 = scmp.eq.s32.totalorder %s554_s23, 2  ;;  %p555_p5 = scmp.ge.s32.totalorder %s860_s21, 1 }
   0x9   : > { %p930_p4 = por %p1101_p1, %p42_p0  ;;  %p163_p7 = scmp.lt.s32.totalorder %s860_s21, 4 }
   0xa   : > { %p935_p6 = por %p156_p3, %p42_p0  ;;  %s862_s27 = smov [#allocation5]  }
   0xb   : > { %s1105_s24 = scalar_select %p930_p4, 1, 0 }
   0xc   : > { %s1106_s25 = scalar_select %p935_p6, 1, 0 }
   0xd   : > { %p940_p8 = pnand %p555_p5, %p163_p7  ;;  %s175_s28 = sshll.u32 %s862_s27, 4  ;;  %s176_s28 = int_to_ptr.vmem [resolvable:$true] %s175_s28 }
   0xe   : > { %s863_s30 = smov [#allocation7]   ;;  %s723_s7 = scalar_lea.vmem %s176_s28, 512 }
   0xf   : > { %s1107_s26 = scalar_select %p940_p8, 1, 0 }
  0x10   : > { %p653_p9 = pneg %p940_p8  ;;  %s191_s6 = sshll.u32 %s863_s30, 4  ;;  %s192_s6 = int_to_ptr.vmem [resolvable:$true] %s191_s6 }
  0x11   : > { %p724_p12 = scmp.ne.s32.totalorder %s176_s28, %s723_s7  ;;  %p731_p3 = scmp.lt.s32.totalorder %s176_s28, %s176_s28 }
  0x12   : > { %p948_p10 = pnand %p653_p9, %p1101_p1  ;;  %p732_p5 = scmp.lt.s32.totalorder %s723_s7, %s723_s7 }
  0x14   : > { %p714_p11 = pneg %p948_p10  ;;  %p733_p7 = por %p732_p5, %p731_p3 }
  0x16   : > { %p726_p13 = pnand %p724_p12, %p714_p11 }
  0x18   : > { %p727_p0 = pneg %p726_p13 }
  0x1a   : > { %p734_p9 = pnand %p733_p7, %p727_p0 }
  0x1c   : > { %737 = shalt.err (!%p734_p9)
}
  0x1d   : > { %s864_s8 = smov 128   ;;  %s865_s9 = smov 8  }
  0x1e   : > { %656 = dma.hbm_to_vmem [thread:$0]  (!%p948_p10), %s1096_s1, 512, %s176_s28, [#allocation6], %s864_s8, %s864_s8, %s865_s9  }
  0x1f   : > { %s749_s12 = scalar_lea.vmem %s192_s6, 2048  ;;  %p757_p2 = scmp.lt.s32.totalorder %s192_s6, %s192_s6 }
  0x20   : > { %p750_p1 = scmp.ne.s32.totalorder %s192_s6, %s749_s12  ;;  %p758_p6 = scmp.lt.s32.totalorder %s749_s12, %s749_s12 }
  0x22   : > { %p752_p12 = pnand %p750_p1, %p714_p11  ;;  %p759_p3 = por %p758_p6, %p757_p2 }
  0x24   : > { %p753_p13 = pneg %p752_p12 }
  0x26   : > { %p760_p0 = pnand %p759_p3, %p753_p13 }
  0x28   : > { %763 = shalt.err (!%p760_p0)
}
  0x29   : > { %659 = dma.hbm_to_vmem [thread:$0]  (!%p948_p10), %s1098_s3, 2048, %s192_s6, [#allocation6], %s864_s8, %s864_s8, %s865_s9  }
  0x2a   : > { %s971_s15 = sadd.s32 1, %s860_s21   ;;  %s29_s16 = sadd.s32 1, %s856_s20 }
  0x2b   : > { %s26_s17 = ssub.s32 %s860_s21, %s971_s15  ;;  %p36_p1 = scmp.ne.s32.totalorder %s856_s20, %s852_s19 }
  0x2c   : > { %p27_p2 = scmp.eq.s32.totalorder %s26_s17, 0  ;;  %p37_p6 = scmp.eq.s32.totalorder %s860_s21, 0 }
  0x2d   : > { %p1109_p11 = scmp.eq.s32.totalorder %s921_s22, 2  ;;  %p670_p7 = scmp.lt.s32.totalorder %s860_s21, 3 }
  0x2e   : > { %s987_s27 = scalar_select %p27_p2, %s856_s20, %s29_s16  }
  0x2f   : > { %p981_p5 = por %p1109_p11, %p36_p1  ;;  %p38_p9 = por %p37_p6, %p36_p1 }
  0x30   : > { %s208_s28 = sand.u32 1, %s856_s20   ;;  %s560_s30 = sshll.u32 %s860_s21, 7 }
  0x31   : > { %s1110_s23 = scalar_select %p981_p5, 1, 0 }
  0x32   : > { %s559_s29 = sshll.u32 %s208_s28, 3  ;;  %s994_s8 = scalar_lea.hbm %s1095_s0, %s560_s30 }
  0x33   : > { %s212_s9 = scalar_lea.vmem [#allocation2], %s559_s29  ;;  %p996_p10 = pnand %p670_p7, %p38_p9 }
  0x34   : > { %s219_s10 = sshll.u32 %s212_s9, 4  ;;  %s209_s12 = scalar_lea.sflag [#allocation3], %s208_s28  ;;  %s220_s10 = int_to_ptr.vmem [resolvable:$true] %s219_s10 }
  0x35   : > { %s764_s13 = scalar_lea.hbm %s994_s8, 128  ;;  %p766_p13 = pneg %p996_p10 }
  0x36   : > { %p765_p12 = scmp.ne.s32.totalorder %s994_s8, %s764_s13  ;;  %s769_s17 = scalar_lea.hbm %s1095_s0, 384 }
  0x37   : > { %p770_p1 = scmp.lt.s32.totalorder %s994_s8, %s1095_s0  ;;  %p771_p2 = scmp.lt.s32.totalorder %s769_s17, %s764_s13 }
  0x38   : > { %p767_p3 = pnand %p766_p13, %p765_p12 }
  0x39   : > { %p772_p6 = por %p771_p2, %p770_p1 }
  0x3a   : > { %p768_p0 = pneg %p767_p3 }
  0x3c   : > { %p773_p11 = pnand %p772_p6, %p768_p0 }
  0x3e   : > { %776 = shalt.err (!%p773_p11)
}
  0x3f   : > { %s777_s6 = scalar_lea.vmem %s220_s10, 128  ;;  %s866_s28 = smov [#allocation2]  }
  0x40   : > { %p778_p7 = scmp.ne.s32.totalorder %s220_s10, %s777_s6  ;;  %s782_s7 = sshll.u32 %s866_s28, 4  ;;  %s783_s7 = int_to_ptr.vmem [resolvable:$false] %s782_s7 }
  0x41   : > { %s784_s9 = scalar_lea.vmem %s783_s7, 256  ;;  %p785_p12 = scmp.lt.s32.totalorder %s220_s10, %s783_s7 }
  0x42   : > { %p780_p9 = pnand %p778_p7, %p766_p13  ;;  %p786_p3 = scmp.lt.s32.totalorder %s784_s9, %s777_s6 }
  0x44   : > { %p781_p5 = pneg %p780_p9  ;;  %p787_p4 = por %p786_p3, %p785_p12 }
  0x46   : > { %p788_p8 = pnand %p787_p4, %p781_p5 }
  0x48   : > { %791 = shalt.err (!%p788_p8)
}
  0x49   : > { %663 = dma.hbm_to_vmem [thread:$0]  (!%p996_p10), %s994_s8, 128, %s220_s10, %s209_s12  }
  0x4a   : > { %p1112_p0 = scmp.ne.s32.totalorder %s1107_s26, 0 }
  0x4b   : > { %s1017_s13 = sand.u32 (!%p1112_p0), 1, %s852_s19   ;;  %p1113_p4 = scmp.ne.s32.totalorder (!%p1112_p0), %s1105_s24, 0 }
  0x4c   : > { %228 = sbr.rel (%p1112_p0) target bundleno = 502 (0x1f6), region = 40  ;;  %s562_s14 = sshll.u32 (!%p1112_p0), %s1017_s13, 3 }
  0x4d   : > { %s231_s16 = scalar_lea.sflag (!%p1112_p0), [#allocation3], %s1017_s13  ;;  %s234_s17 = scalar_lea.vmem (!%p1112_p0), [#allocation2], %s562_s14 }
  0x51   : > { %835 = dma.done.wait (%p1113_p4), %s231_s16, 128  }
  0x52   : > { %837 = vsyncadd (%p1113_p4), %s231_s16, 4294967168  ;;  %p1114_p8 = scmp.eq.s32.totalorder %s921_s22, 0 }
  0x54   : > { %839 = dma.done.wait (%p1114_p8), [#allocation6], 2560   ;;  %p1115_p5 = pmov %p1114_p8 }
  0x55   : > { %v867_v0 = vmov 0.0   ;;  %vm868_vm0 = vmmov 0   ;;  %v273_v1 = vld [vmem:[#allocation5 + $0x18] sm:$0xff]  ;;  %v272_v2 = vld [vmem:[#allocation5 + $0x10] sm:$0xff]  ;;  %v271_v4 = vld [vmem:[#allocation5 + $0x8] sm:$0xff]  ;;  %vm281_vm1 = vcmask 261120  }
  0x56   : > { %841 = vsyncadd (%p1115_p5), [#allocation6], 4294964736  ;;  %595 = vmatprep.subr.mxu0 %v867_v0  ;;  %603 = vmatprep.mubr.msk.f32.mxu0 %vm868_vm0, %v867_v0  ;;  %v371_v3 = vld [vmem:[#allocation7 + $0x78] sm:$0xff]  ;;  %v370_v5 = vld [vmem:[#allocation7 + $0x70] sm:$0xff]  ;;  %s570_s11 = sshll.u32 %s921_s22, 7  ;;  %s268_s12 = scalar_lea.vmem [#allocation8], %s562_s14 }
  0x57   : > { %606 = vmatprep.subr.mxu1 %v867_v0  ;;  %638 = vmatprep.mubr.msk.f32.mxu1 %vm868_vm0, %v867_v0  ;;  %v369_v6 = vld [vmem:[#allocation7 + $0x68] sm:$0xff]  ;;  %v270_v7 = vld [vmem:[#allocation5] sm:$0xff]  ;;  %v269_v8 = vld [vmem:[%s234_s17] sm:$0xff]  ;;  %s465_s30 = sshll.u32 %s268_s12, 4  ;;  %s463_s28 = scalar_lea.hbm %s1100_s5, %s570_s11  ;;  %s466_s30 = int_to_ptr.vmem [resolvable:$true] %s465_s30 }
  0x58   : > { %596 = vmatpush3.msra.mxu0 %v273_v1  ;;  %607 = vmatpush3.msra.mxu1 %v371_v3  ;;  %v368_v9 = vld [vmem:[#allocation7 + $0x60] sm:$0xff]  ;;  %v367_v10 = vld [vmem:[#allocation7 + $0x58] sm:$0xff]  ;;  %v366_v11 = vld [vmem:[#allocation7 + $0x50] sm:$0xff]  ;;  %s452_s7 = scalar_lea.sflag [#allocation4], %s1017_s13  ;;  %s792_s9 = scalar_lea.vmem %s466_s30, 128 }
  0x59   : > { %597 = vmatprep.subr.mxu0 %v867_v0  ;;  %608 = vmatprep.subr.mxu1 %v867_v0  ;;  %v365_v12 = vld [vmem:[#allocation7 + $0x48] sm:$0xff]  ;;  %v364_v13 = vld [vmem:[#allocation7 + $0x40] sm:$0xff]  ;;  %v363_v14 = vld [vmem:[#allocation7 + $0x38] sm:$0xff]  ;;  %p793_p10 = scmp.ne.s32.totalorder %s466_s30, %s792_s9  ;;  %p1116_p13 = scmp.ne.s32.totalorder %s1110_s23, 0 }
  0x5a   : > { %598 = vmatpush3.msra.mxu0 %v272_v2  ;;  %609 = vmatpush3.msra.mxu1 %v370_v5  ;;  %v362_v15 = vld [vmem:[#allocation7 + $0x30] sm:$0xff]  ;;  %v361_v16 = vld [vmem:[#allocation7 + $0x28] sm:$0xff]  ;;  %v360_v17 = vld [vmem:[#allocation7 + $0x20] sm:$0xff]  ;;  %s869_s16 = smov [#allocation8]  }
  0x5b   : > { %599 = vmatprep.subr.mxu0 %v867_v0  ;;  %610 = vmatprep.subr.mxu1 %v867_v0  ;;  %v359_v18 = vld [vmem:[#allocation7 + $0x18] sm:$0xff]  ;;  %v358_v19 = vld [vmem:[#allocation7 + $0x10] sm:$0xff]  ;;  %v357_v20 = vld [vmem:[#allocation7 + $0x8] sm:$0xff]  ;;  %p794_p1 = pnand %p793_p10, %p1116_p13  ;;  %s796_s22 = sshll.u32 %s869_s16, 4  ;;  %s797_s22 = int_to_ptr.vmem [resolvable:$false] %s796_s22 }
  0x5c   : > { %600 = vmatpush3.msra.mxu0 %v271_v4  ;;  %611 = vmatpush3.msra.mxu1 %v369_v6  ;;  %v356_v21 = vld [vmem:[#allocation7] sm:$0xff]  ;;  %v566_v22 = vld [vmem:[%s1097_s2] ss:$0 sm:$0xff]  ;;  %s798_s14 = scalar_lea.vmem %s797_s22, 256  ;;  %p799_p6 = scmp.lt.s32.totalorder %s466_s30, %s797_s22 }
  0x5d   : > { %601 = vmatprep.subr.mxu0 %v867_v0  ;;  %612 = vmatprep.subr.mxu1 %v867_v0  ;;  %v568_v27 = vld [vmem:[%s1099_s4] ss:$0 sm:$0xff]  ;;  %p795_p2 = pneg %p794_p1  ;;  %p800_p11 = scmp.lt.s32.totalorder %s798_s14, %s792_s9 }
  0x5e   : > { %602 = vmatpush3.msra.mxu0 %v270_v7  ;;  %613 = vmatpush3.msra.mxu1 %v368_v9 }
  0x5f   : > { %604 = vmatmul.mubr.msk.f32.vlgmr.msra.gmra.mxu0 %vm281_vm1, %v269_v8  ;;  %614 = vmatprep.subr.mxu1 %v867_v0  ;;  %p801_p7 = por %p800_p11, %p799_p6 }
  0x60   : > { %615 = vmatpush3.msra.mxu1 %v367_v10 }
  0x61   : > { %616 = vmatprep.subr.mxu1 %v867_v0  ;;  %p802_p9 = pnand %p801_p7, %p795_p2 }
  0x62   : > { %617 = vmatpush3.msra.mxu1 %v366_v11 }
  0x63   : > { %618 = vmatprep.subr.mxu1 %v867_v0 }
  0x64   : > { %619 = vmatpush3.msra.mxu1 %v365_v12 }
  0x65   : > { %620 = vmatprep.subr.mxu1 %v867_v0 }
  0x66   : > { %621 = vmatpush3.msra.mxu1 %v364_v13 }
  0x67   : > { %622 = vmatprep.subr.mxu1 %v867_v0 }
  0x68   : > { %623 = vmatpush3.msra.mxu1 %v363_v14 }
  0x69   : > { %624 = vmatprep.subr.mxu1 %v867_v0 }
  0x6a   : > { %625 = vmatpush3.msra.mxu1 %v362_v15 }
  0x6b   : > { %626 = vmatprep.subr.mxu1 %v867_v0 }
  0x6c   : > { %627 = vmatpush3.msra.mxu1 %v361_v16 }
  0x6d   : > { %628 = vmatprep.subr.mxu1 %v867_v0 }
  0x6e   : > { %629 = vmatpush3.msra.mxu1 %v360_v17 }
  0x6f   : > { %630 = vmatprep.subr.mxu1 %v867_v0 }
  0x70   : > { %631 = vmatpush3.msra.mxu1 %v359_v18 }
  0x71   : > { %632 = vmatprep.subr.mxu1 %v867_v0 }
  0x72   : > { %633 = vmatpush3.msra.mxu1 %v358_v19 }
  0x73   : > { %634 = vmatprep.subr.mxu1 %v867_v0 }
  0x74   : > { %635 = vmatpush3.msra.mxu1 %v357_v20 }
  0x75   : > { %636 = vmatprep.subr.mxu1 %v867_v0 }
  0x76   : > { %637 = vmatpush3.msra.mxu1 %v356_v21 }
 0x11f   : > { %v351_v23 = vpop.f32.mrf.mxu0 }
 0x120   : > { %v352_v24 = vadd.f32 %v566_v22, %v351_v23 }
 0x121   : > { %v605_v25 = vpop.f32.mrf.mxu0 }
 0x122   : > { %v355_v26 = vmax.f32 %v352_v24, 0.0 }
 0x124   : > { %639 = vmatmul.mubr.f32.vlgmr.msra.gmra.mxu1 %v355_v26 }
 0x1e4   : > { %v445_v28 = vpop.f32.mrf.mxu1 }
 0x1e5   : > { %v446_v29 = vadd.f32 %v568_v27, %v445_v28 }
 0x1e6   : > { %v640_v30 = vpop.f32.mrf.mxu1 }
 0x1e7   : > { %v449_v31 = vmax.f32 %v446_v29, 0.0 }
 0x1e9   : > { %450 = vst [vmem:[%s268_s12] sm:$0xff] %v449_v31 }
 0x1ea   : > { %805 = shalt.err (!%p802_p9)
}
 0x1eb   : > { %s806_s17 = scalar_lea.hbm %s463_s28, 128  ;;  %s810_s26 = scalar_lea.hbm %s1100_s5, 384 }
 0x1ec   : > { %p807_p12 = scmp.ne.s32.totalorder %s463_s28, %s806_s17  ;;  %p811_p4 = scmp.lt.s32.totalorder %s463_s28, %s1100_s5 }
 0x1ed   : > { %p812_p8 = scmp.lt.s32.totalorder %s810_s26, %s806_s17 }
 0x1ee   : > { %p808_p3 = pnand %p807_p12, %p1116_p13 }
 0x1ef   : > { %p813_p5 = por %p812_p8, %p811_p4 }
 0x1f0   : > { %p809_p0 = pneg %p808_p3 }
 0x1f2   : > { %p814_p10 = pnand %p813_p5, %p809_p0 }
 0x1f4   : > { %817 = shalt.err (!%p814_p10)
}
 0x1f5   : > { %651 = dma.vmem_to_hbm [thread:$0]  (%p1116_p13), %s466_s30, 128, %s463_s28, %s452_s7  }
 0x1f6 PF: > { %p673_p1 = scmp.ge.s32.totalorder %s860_s21, 2  ;;  %s477_s11 = sand.u32 1, %s848_s18  }
 0x1f7   : > { %p1117_p2 = scmp.ne.s32.totalorder %s1106_s25, 0  ;;  %s478_s12 = scalar_lea.sflag [#allocation4], %s477_s11 }
 0x1f9   : > { %p665_p6 = pnand %p673_p1, %p1117_p2 }
 0x1fb   : > { %p666_p11 = pneg %p665_p6 }
 0x1fd   : > { %843 = dma.done.wait (%p666_p11), %s478_s12, 128  }
 0x1fe   : > { %845 = vsyncadd (%p666_p11), %s478_s12, 4294967168  ;;  %p19_p7 = scmp.ge.s32.totalorder %s971_s15, 5   ;;  %s1118_s18 = smov %s852_s19 }
 0x1ff   : > { %s1119_s19 = smov %s856_s20  ;;  %s1120_s20 = smov %s987_s27 }
 0x200   : > { %s1121_s21 = smov %s971_s15  ;;  %21 = sbr.rel (!%p19_p7) target bundleno = 6 (0x6), region = 93 }
 0x205   :  { %483 = vsyncpa [#allocation3], 1 }
 0x206   :  { %485 = vsyncpa [#allocation3 + $0x1], 1 }
 0x207   :  { %486 = vsyncpa [#allocation6], 1 }
 0x208   :  { %487 = vsyncpa [#allocation4], 1 }
 0x209   :  { %489 = vsyncpa [#allocation4 + $0x1], 1 }

</bundles_post_ra>
